<compile_context>
chip_gen: v5e
topology: v5e:2x2
jax: 0.10.0
libtpu: 0.0.40
codegen_flags: <defaults>
</compile_context>

<pallas_src>
import functools

import jax
import jax.numpy as jnp
from jax import lax
from jax.experimental import pallas as pl
from jax.experimental.pallas import tpu as pltpu

_LANE = 128
_ACC_ROWS = 32  # accumulator sublane rows -> 4 independent vreg add-chains


def _round_up(x, m):
    return (x + m - 1) // m * m


def _num_core_splits():
    """2 on dual-TensorCore chips (v7x), else 1 (v5e / v6e single TC)."""
    try:
        kind = jax.devices()[0].device_kind.lower()
        if "v7" in kind:
            return 2
    except Exception:
        pass
    try:
        info = pltpu.get_tpu_info()
        for attr in ("num_tensorcores", "tensorcore_count", "num_cores"):
            n = getattr(info, attr, None)
            if n:
                return max(1, min(2, int(n)))
    except Exception:
        pass
    return 1


def _masked_l1_sum_kernel(pred_ref, gt_ref, o_ref, acc_ref, *,
                          mask_val, valid_rows, tile_rows, tiles_per_split):
    p = pl.program_id(0)  # core-split axis ("parallel")
    j = pl.program_id(1)  # sequential reduction axis ("arbitrary")

    @pl.when(j == 0)
    def _():
        acc_ref[...] = jnp.zeros_like(acc_ref)

    # Load once in native dtype (halves DMA bytes for bf16); upcast in-VMEM.
    gt_native = gt_ref[...]
    gt = gt_native.astype(jnp.float32)
    pred = pred_ref[...].astype(jnp.float32)
    diff = jnp.abs(gt - pred)

    if mask_val is not None:
        # Compare in the input's native dtype (matches PyTorch semantics).
        mv = jnp.asarray(mask_val, dtype=gt_native.dtype)

    # Scalar test: is this tile entirely inside the real array?  Uses the
    # UNCLAMPED program ids, so the clamped duplicate tile of split 1 (if any)
    # and the ragged last tile both fall into the boundary branch.
    row_start = (p * tiles_per_split + j) * tile_rows
    interior = row_start + tile_rows <= valid_rows

    @pl.when(interior)
    def _():
        # Steady state: no iota, no row mask -- pure sub/abs/select/add.
        d = diff
        if mask_val is not None:
            d = jnp.where(gt_native == mv, jnp.float32(0.0), d)
        acc_ref[...] += d.reshape(-1, _ACC_ROWS, _LANE).sum(axis=0)

    @pl.when(jnp.logical_not(interior))
    def _():
        # Boundary path: fuse row-range mask and mask_val mask into ONE select.
        row_ids = row_start + lax.broadcasted_iota(jnp.int32, diff.shape, 0)
        keep = row_ids < valid_rows
        if mask_val is not None:
            keep = jnp.logical_and(keep, gt_native != mv)
        d = jnp.where(keep, diff, jnp.float32(0.0))
        acc_ref[...] += d.reshape(-1, _ACC_ROWS, _LANE).sum(axis=0)

    @pl.when(j == pl.num_programs(1) - 1)
    def _():
        # Single cross-lane reduction, once per core split.
        o_ref[...] = jnp.broadcast_to(jnp.sum(acc_ref[...]), (1, _LANE))


def masked_depth_loss(depth_out, depth_gt, mask_val=0, *, tile_rows=4096):
    """Pallas TPU equivalent of MaskedDepthLoss(mask_val)(depth_out, depth_gt)."""
    assert depth_out.shape == depth_gt.shape
    n_total = int(depth_out.size)
    assert n_total > 0

    pred = depth_out.reshape(-1)
    gt = depth_gt.reshape(-1)

    # Pad only to a lane multiple (<=127 elems); both sides get the same zero
    # pad so it contributes |0-0| = 0 to the masked-L1 sum.
    pad = (-n_total) % _LANE
    if pad:
        pred = jnp.pad(pred, (0, pad))
        gt = jnp.pad(gt, (0, pad))

    rows = (n_total + pad) // _LANE
    pred2d = pred.reshape(rows, _LANE)
    gt2d = gt.reshape(rows, _LANE)

    splits = _num_core_splits()

    # Large lane-dense blocks: 4096 x 128 f32 = 2 MiB per input per buffer;
    # 2 inputs x 2 pipeline buffers = 8 MiB -> fits v5e's 16 MiB default
    # scoped VMEM and v6e/v7x with headroom (raise vmem_limit_bytes if you
    # sweep tile_rows past 4096 on v5e).
    tile_rows_eff = min(int(tile_rows), _round_up(rows, _ACC_ROWS))
    tile_rows_eff = _round_up(tile_rows_eff, _ACC_ROWS)
    n_tiles = pl.cdiv(rows, tile_rows_eff)
    tiles_per_split = pl.cdiv(n_tiles, splits)

    def in_map(p, j):
        # Clamp so the (at most one) duplicate tile of the second split stays
        # in bounds; its contribution is zeroed in-kernel by the row mask,
        # which uses the *unclamped* program ids.
        return (jnp.minimum(p * tiles_per_split + j, n_tiles - 1), 0)

    kernel = functools.partial(
        _masked_l1_sum_kernel,
        mask_val=mask_val,
        valid_rows=rows,
        tile_rows=tile_rows_eff,
        tiles_per_split=tiles_per_split,
    )

    # TODO(synk): on v7x, verify in xprof that the leading "parallel" axis
    # actually shards across both TensorCores; if not, switch it to
    # pltpu.CORE_PARALLEL.
    partials = pl.pallas_call(
        kernel,
        out_shape=jax.ShapeDtypeStruct((splits, _LANE), jnp.float32),
        grid_spec=pltpu.PrefetchScalarGridSpec(
            num_scalar_prefetch=0,
            grid=(splits, tiles_per_split),
            in_specs=[
                pl.BlockSpec((tile_rows_eff, _LANE), in_map),
                pl.BlockSpec((tile_rows_eff, _LANE), in_map),
            ],
            out_specs=pl.BlockSpec((1, _LANE), lambda p, j: (p, 0)),
            scratch_shapes=[pltpu.VMEM((_ACC_ROWS, _LANE), jnp.float32)],
        ),
        compiler_params=pltpu.CompilerParams(
            dimension_semantics=("parallel", "arbitrary"),
        ),
    )(pred2d, gt2d)

    # Mean over ALL original elements (masked ones contribute 0, like PyTorch).
    return jnp.sum(partials[:, 0]) / jnp.float32(n_total)


if __name__ == "__main__":
    key = jax.random.PRNGKey(0)
    k1, k2, k3 = jax.random.split(key, 3)

    # Small depth-map-like shapes: (batch=2, channels=1, H=16, W=16), NCHW.
    shape = (2, 1, 16, 16)
    depth_out = jax.random.normal(k1, shape, dtype=jnp.float32)
    depth_gt = jax.random.normal(k2, shape, dtype=jnp.float32)
    # Inject exact-zero entries into gt so the mask path (gt == 0) is exercised.
    zero_mask = jax.random.bernoulli(k3, p=0.3, shape=shape)
    depth_gt = jnp.where(zero_mask, 0.0, depth_gt)

    loss = masked_depth_loss(depth_out, depth_gt, mask_val=0)
    jax.block_until_ready(loss)

    # Pure-JAX reference check (same semantics as the PyTorch module).
    diff = jnp.abs(depth_gt - depth_out)
    diff = jnp.where(depth_gt == 0, 0.0, diff)
    ref = diff.mean()

    assert jnp.allclose(loss, ref, rtol=1e-6, atol=1e-6), (loss, ref)
    print("KERNEL_OK")
</pallas_src>

<mosaic_0001>
module attributes {stable_mosaic.version = 11 : i64} {
  func.func @_masked_l1_sum_kernel(%arg0: i32, %arg1: i32, %arg2: memref<32x128xf32, #tpu.memory_space<vmem>>, %arg3: memref<32x128xf32, #tpu.memory_space<vmem>>, %arg4: memref<1x128xf32, #tpu.memory_space<vmem>>, %arg5: memref<32x128xf32, #tpu.memory_space<vmem>>) attributes {dimension_semantics = [#tpu.dimension_semantics<parallel>, #tpu.dimension_semantics<arbitrary>], iteration_bounds = array<i64: 1, 1>, scalar_prefetch = 0 : i64, scratch_operands = 1 : i64, tpu.core_type = #tpu.core_type<tc>, window_params = [{transform_indices = @transform_0, window_bounds = array<i64: 32, 128>}, {transform_indices = @transform_1, window_bounds = array<i64: 32, 128>}, {transform_indices = @transform_2, window_bounds = array<i64: 1, 128>}]} {
    %c0_i32 = arith.constant 0 : i32
    %0 = arith.cmpi eq, %arg1, %c0_i32 : i32
    %1 = arith.extui %0 : i1 to i32
    %c0_i32_0 = arith.constant 0 : i32
    %2 = arith.cmpi ne, %1, %c0_i32_0 : i32
    scf.if %2 {
      %cst_10 = arith.constant 0.000000e+00 : f32
      %20 = vector.broadcast %cst_10 : f32 to vector<32x128xf32>
      %c0_11 = arith.constant 0 : index
      %c0_12 = arith.constant 0 : index
      %21 = vector.load %arg5[%c0_11, %c0_12] : memref<32x128xf32, #tpu.memory_space<vmem>>, vector<32x128xf32>
      tpu.vector_store %arg5[%c0_11, %c0_12], %20 {strides = array<i32>} : memref<32x128xf32, #tpu.memory_space<vmem>>, vector<32x128xf32>,
    } else {
    }
    %c0 = arith.constant 0 : index
    %c0_1 = arith.constant 0 : index
    %3 = vector.load %arg3[%c0, %c0_1] : memref<32x128xf32, #tpu.memory_space<vmem>>, vector<32x128xf32>
    %c0_2 = arith.constant 0 : index
    %c0_3 = arith.constant 0 : index
    %4 = vector.load %arg2[%c0_2, %c0_3] : memref<32x128xf32, #tpu.memory_space<vmem>>, vector<32x128xf32>
    %5 = arith.subf %3, %4 : vector<32x128xf32>
    %6 = math.absf %5 : vector<32x128xf32>
    %c1_i32 = arith.constant 1 : i32
    %7 = arith.muli %arg0, %c1_i32 : i32
    %8 = arith.addi %7, %arg1 : i32
    %c32_i32 = arith.constant 32 : i32
    %9 = arith.muli %8, %c32_i32 : i32
    %c32_i32_4 = arith.constant 32 : i32
    %10 = arith.addi %9, %c32_i32_4 : i32
    %c4_i32 = arith.constant 4 : i32
    %11 = arith.cmpi sle, %10, %c4_i32 : i32
    %12 = arith.extui %11 : i1 to i32
    %cst = arith.constant 0.000000e+00 : f32
    %c0_i32_5 = arith.constant 0 : i32
    %13 = arith.cmpi ne, %12, %c0_i32_5 : i32
    scf.if %13 {
      %20 = vector.broadcast %cst : f32 to vector<32x128xf32>
      %21 = arith.cmpf oeq, %3, %20 : vector<32x128xf32>
      %cst_10 = arith.constant 0.000000e+00 : f32
      %22 = vector.broadcast %cst_10 : f32 to vector<32x128xf32>
      %23 = arith.select %21, %22, %6 : vector<32x128xi1>, vector<32x128xf32>
      %c0_11 = arith.constant 0 : index
      %c0_12 = arith.constant 0 : index
      %24 = vector.load %arg5[%c0_11, %c0_12] : memref<32x128xf32, #tpu.memory_space<vmem>>, vector<32x128xf32>
      %25 = vector.shape_cast %23 : vector<32x128xf32> to vector<1x32x128xf32>
      %cst_13 = arith.constant dense<0.000000e+00> : vector<32x128xf32>
      %26 = vector.multi_reduction <add>, %25, %cst_13 [0] : vector<1x32x128xf32> to vector<32x128xf32>
      %27 = arith.addf %24, %26 : vector<32x128xf32>
      %c0_14 = arith.constant 0 : index
      %c0_15 = arith.constant 0 : index
      %28 = vector.load %arg5[%c0_14, %c0_15] : memref<32x128xf32, #tpu.memory_space<vmem>>, vector<32x128xf32>
      tpu.vector_store %arg5[%c0_14, %c0_15], %27 {strides = array<i32>} : memref<32x128xf32, #tpu.memory_space<vmem>>, vector<32x128xf32>,
    } else {
    }
    %true = arith.constant true
    %14 = arith.xori %11, %true : i1
    %15 = arith.extui %14 : i1 to i32
    %cst_6 = arith.constant 0.000000e+00 : f32
    %c0_i32_7 = arith.constant 0 : i32
    %16 = arith.cmpi ne, %15, %c0_i32_7 : i32
    scf.if %16 {
      %20 = tpu.iota {dimensions = array<i32: 0>} : vector<32x128xi32>
      %21 = vector.broadcast %9 : i32 to vector<32x128xi32>
      %22 = arith.addi %21, %20 : vector<32x128xi32>
      %c4_i32_10 = arith.constant 4 : i32
      %23 = vector.broadcast %c4_i32_10 : i32 to vector<32x128xi32>
      %24 = arith.cmpi slt, %22, %23 : vector<32x128xi32>
      %25 = vector.broadcast %cst_6 : f32 to vector<32x128xf32>
      %26 = arith.cmpf one, %3, %25 : vector<32x128xf32>
      %27 = arith.andi %24, %26 : vector<32x128xi1>
      %cst_11 = arith.constant 0.000000e+00 : f32
      %28 = vector.broadcast %cst_11 : f32 to vector<32x128xf32>
      %29 = arith.select %27, %6, %28 : vector<32x128xi1>, vector<32x128xf32>
      %c0_12 = arith.constant 0 : index
      %c0_13 = arith.constant 0 : index
      %30 = vector.load %arg5[%c0_12, %c0_13] : memref<32x128xf32, #tpu.memory_space<vmem>>, vector<32x128xf32>
      %31 = vector.shape_cast %29 : vector<32x128xf32> to vector<1x32x128xf32>
      %cst_14 = arith.constant dense<0.000000e+00> : vector<32x128xf32>
      %32 = vector.multi_reduction <add>, %31, %cst_14 [0] : vector<1x32x128xf32> to vector<32x128xf32>
      %33 = arith.addf %30, %32 : vector<32x128xf32>
      %c0_15 = arith.constant 0 : index
      %c0_16 = arith.constant 0 : index
      %34 = vector.load %arg5[%c0_15, %c0_16] : memref<32x128xf32, #tpu.memory_space<vmem>>, vector<32x128xf32>
      tpu.vector_store %arg5[%c0_15, %c0_16], %33 {strides = array<i32>} : memref<32x128xf32, #tpu.memory_space<vmem>>, vector<32x128xf32>,
    } else {
    }
    %c0_i32_8 = arith.constant 0 : i32
    %17 = arith.cmpi eq, %arg1, %c0_i32_8 : i32
    %18 = arith.extui %17 : i1 to i32
    %c0_i32_9 = arith.constant 0 : i32
    %19 = arith.cmpi ne, %18, %c0_i32_9 : i32
    scf.if %19 {
      %c0_10 = arith.constant 0 : index
      %c0_11 = arith.constant 0 : index
      %20 = vector.load %arg5[%c0_10, %c0_11] : memref<32x128xf32, #tpu.memory_space<vmem>>, vector<32x128xf32>
      %21 = vector.shape_cast %20 : vector<32x128xf32> to vector<1x32x128xf32>
      %cst_12 = arith.constant dense<0.000000e+00> : vector<1xf32>
      %22 = vector.multi_reduction <add>, %21, %cst_12 [1, 2] : vector<1x32x128xf32> to vector<1xf32>
      %23 = vector.shape_cast %22 : vector<1xf32> to vector<1x1x1xf32>
      %24 = vector.extract %23[0, 0, 0] : f32 from vector<1x1x1xf32>
      %25 = vector.broadcast %24 : f32 to vector<1x128xf32>
      %c0_13 = arith.constant 0 : index
      %c0_14 = arith.constant 0 : index
      %26 = vector.load %arg4[%c0_13, %c0_14] : memref<1x128xf32, #tpu.memory_space<vmem>>, vector<1x128xf32>
      tpu.vector_store %arg4[%c0_13, %c0_14], %25 {strides = array<i32>} : memref<1x128xf32, #tpu.memory_space<vmem>>, vector<1x128xf32>,
    } else {
    }
    return
  }
  func.func @transform_0(%arg0: i32, %arg1: i32) -> (i32, i32) {
    %c1_i32 = arith.constant 1 : i32
    %0 = arith.muli %arg0, %c1_i32 : i32
    %1 = arith.addi %0, %arg1 : i32
    %c0_i32 = arith.constant 0 : i32
    %2 = arith.minsi %1, %c0_i32 : i32
    %c0_i32_0 = arith.constant 0 : i32
    %c0_i32_1 = arith.constant 0 : i32
    return %2, %c0_i32_0 : i32, i32
  }
  func.func @transform_1(%arg0: i32, %arg1: i32) -> (i32, i32) {
    %c1_i32 = arith.constant 1 : i32
    %0 = arith.muli %arg0, %c1_i32 : i32
    %1 = arith.addi %0, %arg1 : i32
    %c0_i32 = arith.constant 0 : i32
    %2 = arith.minsi %1, %c0_i32 : i32
    %c0_i32_0 = arith.constant 0 : i32
    %c0_i32_1 = arith.constant 0 : i32
    return %2, %c0_i32_0 : i32, i32
  }
  func.func @transform_2(%arg0: i32, %arg1: i32) -> (i32, i32) {
    %c0_i32 = arith.constant 0 : i32
    %c0_i32_0 = arith.constant 0 : i32
    return %arg0, %c0_i32 : i32, i32
  }
}

</mosaic_0001>

<bundles_post_ra>
// kernel: tpu_custom_call.1
= control target key start
LH: loop header
LB: loop body
LE: loop exit
PB: predicated region body
PF: predicated region fallthrough
CT: control target
= control target key end

     0   :  { %7 = vsyncpa [#allocation4], 0  ;;  %s335_s0 = inlined_call_operand.hbm [shape: f32[4,128], index: 0, kind: input, shape index: {}]   ;;  %s336_s1 = inlined_call_operand.hbm [shape: f32[4,128], index: 1, kind: input, shape index: {}]   ;;  %s337_s2 = inlined_call_operand.hbm [shape: f32[1,128], index: 2, kind: output, shape index: {}]  }
   0x1   :  { %8 = vsyncpa [#allocation7], 0 }
   0x2   :  { %9 = vsyncpa [#allocation5], 0 }
   0x3   :  { %20 = vsyncadd [#allocation4], 448  ;;  %s25_s11 = sshll.u32 %s335_s0, 4  ;;  %s306_s12 = smov [#allocation3]   ;;  %s26_s11 = int_to_ptr.hbm [resolvable:$true] %s25_s11 }
   0x4   :  { %s27_s13 = sshll.u32 %s306_s12, 4  ;;  %s307_s14 = smov 64   ;;  %s28_s13 = int_to_ptr.vmem [resolvable:$true] %s27_s13 }
   0x5   :  { %s308_s15 = smov 4  }
   0x6   :  { %33 = dma.hbm_to_vmem [thread:$0]  %s26_s11, 64, %s28_s13, [#allocation4], %s307_s14, %s307_s14, %s308_s15  }
   0x7   :  { %44 = vsyncadd [#allocation7], 448  ;;  %s49_s18 = sshll.u32 %s336_s1, 4  ;;  %s309_s19 = smov [#allocation6]   ;;  %s50_s18 = int_to_ptr.hbm [resolvable:$true] %s49_s18 }
   0x8   :  { %s51_s20 = sshll.u32 %s309_s19, 4  ;;  %s52_s20 = int_to_ptr.vmem [resolvable:$true] %s51_s20 }
   0x9   :  { %57 = dma.hbm_to_vmem [thread:$0]  %s50_s18, 64, %s52_s20, [#allocation7], %s307_s14, %s307_s14, %s308_s15  }
   0xa   :  { %300 = dma.done.wait [#allocation4], 512  }
   0xb   :  { %301 = vsyncadd [#allocation4], 4294966784 }
   0xc   :  { %302 = dma.done.wait [#allocation7], 512  }
   0xd   :  { %303 = vsyncadd [#allocation7], 4294966784  ;;  %v136_v0 = vlaneseq  ;;  %v86_v2 = vld [vmem:[#allocation6] sm:$0xff]  ;;  %s310_s0 = smov [#allocation8]   ;;  %s206_s23 = sshll.u32 %s337_s2, 4  ;;  %s207_s23 = int_to_ptr.hbm [resolvable:$true] %s206_s23 }
   0xe   :  { %v90_v3 = vld [vmem:[#allocation3] sm:$0xff]  ;;  %vm150_vm1 = vcmp.ne.f32.partialorder %v86_v2, 0.0  ;;  %s204_s1 = sshll.u32 %s310_s0, 4  ;;  %s205_s1 = int_to_ptr.vmem [resolvable:$true] %s204_s1 }
   0xf   :  { %v137_v1 = vshrl.u32 %v136_v0, 7  ;;  %v94_v4 = vsub.f32 %v86_v2, %v90_v3 }
  0x11   :  { %vm146_vm0 = vcmp.lt.s32.totalorder %v137_v1, 4  ;;  %v98_v5 = vand.u32 2147483647, %v94_v4 }
  0x12   :  { %vm154_vm2 = vmand %vm146_vm0, %vm150_vm1 }
  0x13   :  { %v158_v6 = vsel %vm154_vm2, %v98_v5, 0.0 }
  0x14   :  { %188 = vadd.xlane.f32.xlu0 %v158_v6 }
  0x87   :  { %v189_v7 = vpop.xlane.xlu0 %188 }
  0x88   :  { %v190_v8 = vrot.slane %v189_v7, 4 }
  0x8a   :  { %v191_v9 = vadd.f32 %v190_v8, %v189_v7 }
  0x8c   :  { %v192_v10 = vrot.slane %v191_v9, 2 }
  0x8e   :  { %v193_v11 = vadd.f32 %v192_v10, %v191_v9 }
  0x90   :  { %v194_v12 = vrot.slane %v193_v11, 1 }
  0x92   :  { %v195_v13 = vadd.f32 %v194_v12, %v193_v11 }
  0x94   :  { %221 = vpush %v195_v13 }
  0xc5   :  { %s222_s24 = spop %221 }
  0xc6   :  { %v197_v14 = vstv %s222_s24 }
  0xc7   :  { %198 = vst [vmem:[#allocation8] sm:$0x1] %v197_v14 }
  0xc8   :  { %209 = dma.vmem_to_hbm [thread:$0]  %s205_s1, 16, %s207_s23, [#allocation5]  }
  0xc9   :  { %304 = dma.done.wait [#allocation5], 16  }
  0xca   :  { %305 = vsyncadd [#allocation5], 4294967280 }
  0xcb   :  { %214 = vsyncpa [#allocation4], 1 }
  0xcc   :  { %215 = vsyncpa [#allocation7], 1 }
  0xcd   :  { %216 = vsyncpa [#allocation5], 1 }

</bundles_post_ra>
